<compile_context>
chip_gen: v7x
topology: tpu7x:2x2x1
jax: 0.10.0
libtpu: 0.0.40
codegen_flags: <defaults>
</compile_context>

<pallas_src>
import jax
import jax.numpy as jnp
import numpy as np
from jax.experimental import pallas as pl
from jax.experimental.pallas import tpu as pltpu

MID = 100       # real middle width of the module
MID_PAD = 128   # lane-padded middle width


# ----------------------------------------------------------------------------
# Kernels
# ----------------------------------------------------------------------------
def _step_kernel(
    x_ref, h_ref, c_ref,            # (B, I), (B, H), (B, H)
    w1x_ref, w1h_ref, w1c_ref,      # (I, N1), (H, N1), (H, N1)   N1 = MID_PAD + H
    b1_ref,                         # (1, N1)
    w2_ref, b2_ref,                 # (N1, N2), (1, N2)           N2 = O + H
    out_ref, hid_ref, cell_ref,     # (B, O), (B, H), (B, H)
):
    H = hid_ref.shape[1]
    O = out_ref.shape[1]
    N1 = b1_ref.shape[1]
    MP = N1 - H                     # = MID_PAD

    # Fused layer 1: [mid | hidden'] in one pass per operand.
    f1 = (
        jnp.dot(x_ref[...], w1x_ref[...], preferred_element_type=jnp.float32)
        + jnp.dot(h_ref[...], w1h_ref[...], preferred_element_type=jnp.float32)
        + jnp.dot(c_ref[...], w1c_ref[...], preferred_element_type=jnp.float32)
        + b1_ref[...]
    )
    hid = f1[:, MP:MP + H]          # vreg-aligned slice (offset 128)

    # Fused layer 2 (block-diagonal weight): [out | pre-tanh cell] in one pass.
    f2 = jnp.dot(f1, w2_ref[...], preferred_element_type=jnp.float32) + b2_ref[...]

    out_ref[...] = f2[:, :O].astype(out_ref.dtype)
    hid_ref[...] = hid.astype(hid_ref.dtype)
    cell_ref[...] = jnp.tanh(f2[:, O:O + H]).astype(cell_ref.dtype)


def _seq_kernel(
    x_ref,                          # (1, B, I) current time step
    h0_ref, c0_ref,                 # (B, H) initial state (read only at t == 0)
    w1x_ref, w1h_ref, w1c_ref, b1_ref,
    w2_ref, b2_ref,
    out_ref,                        # (1, B, O)
    hfin_ref, cfin_ref,             # (B, H) final state (constant-index blocks)
    h_sc, c_sc,                     # VMEM scratch: persistent hidden / cell carry
):
    t = pl.program_id(0)

    @pl.when(t == 0)
    def _():
        h_sc[...] = h0_ref[...]
        c_sc[...] = c0_ref[...]

    H = h_sc.shape[1]
    O = out_ref.shape[2]
    N1 = b1_ref.shape[1]
    MP = N1 - H

    x = x_ref[0]                    # (B, I)

    f1 = (
        jnp.dot(x, w1x_ref[...], preferred_element_type=jnp.float32)
        + jnp.dot(h_sc[...], w1h_ref[...], preferred_element_type=jnp.float32)
        + jnp.dot(c_sc[...], w1c_ref[...], preferred_element_type=jnp.float32)
        + b1_ref[...]
    )
    hid = f1[:, MP:MP + H]
    f2 = jnp.dot(f1, w2_ref[...], preferred_element_type=jnp.float32) + b2_ref[...]
    cell = jnp.tanh(f2[:, O:O + H])

    out_ref[0] = f2[:, :O].astype(out_ref.dtype)

    # carry state in VMEM for the next grid step
    h_sc[...] = hid
    c_sc[...] = cell

    # constant-index output blocks: only the final value is written back to HBM
    hfin_ref[...] = hid.astype(hfin_ref.dtype)
    cfin_ref[...] = cell.astype(cfin_ref.dtype)


# ----------------------------------------------------------------------------
# One-time parameter packing (hoisted out of the per-step path)
# ----------------------------------------------------------------------------
def prepare_params(p):
    """Pack PyTorch-layout params into fused, lane-padded kernel weights."""
    I, H, O = p["input_dim"], p["hidden_dim"], p["output_dim"]
    M = p["W_comb_middle"].shape[0]          # 100
    MP = MID_PAD
    K = I + 2 * H
    N1 = MP + H
    N2 = O + H

    W_hid = jnp.asarray(p["W_comb_hidden"], jnp.float32).T       # (K, H)
    W_mid = jnp.asarray(p["W_comb_middle"], jnp.float32).T       # (K, M)

    # Fused layer-1 weight / bias: columns [0:M]=middle (pad to 128), [MP:]=hidden.
    W1 = jnp.zeros((K, N1), jnp.float32)
    W1 = W1.at[:, :M].set(W_mid)
    W1 = W1.at[:, MP:].set(W_hid)
    b1 = jnp.zeros((1, N1), jnp.float32)
    b1 = b1.at[0, :M].set(jnp.asarray(p["b_comb_middle"], jnp.float32))
    b1 = b1.at[0, MP:].set(jnp.asarray(p["b_comb_hidden"], jnp.float32))

    # Fused layer-2 block-diagonal weight / bias:
    #   rows[0:M]  x cols[0:O]  = W_middle_out.T   (padded rows are zero)
    #   rows[MP:]  x cols[O:]   = W_cell.T
    W2 = jnp.zeros((N1, N2), jnp.float32)
    W2 = W2.at[:M, :O].set(jnp.asarray(p["W_middle_out"], jnp.float32).T)
    W2 = W2.at[MP:, O:].set(jnp.asarray(p["W_cell"], jnp.float32).T)
    b2 = jnp.zeros((1, N2), jnp.float32)
    b2 = b2.at[0, :O].set(jnp.asarray(p["b_middle_out"], jnp.float32))
    b2 = b2.at[0, O:].set(jnp.asarray(p["b_cell"], jnp.float32))

    # Pre-split layer-1 rows (x / hidden / cell) so kernels never concatenate
    # along the lane dim; row offsets 0, I, I+H are all multiples of 8.
    return dict(
        input_dim=I, hidden_dim=H, output_dim=O,
        W1x=W1[:I], W1h=W1[I:I + H], W1c=W1[I + H:],
        b1=b1, W2=W2, b2=b2,
    )


# ----------------------------------------------------------------------------
# Wrappers
# ----------------------------------------------------------------------------
def _full_spec(a):
    nd = a.ndim
    return pl.BlockSpec(a.shape, lambda *_, _nd=nd: (0,) * _nd)


def textnet_order2_forward(x, hidden, cell, pk):
    """One forward step (== TEXTnetOrder2.forward). Returns (out, hidden', cell')."""
    B = x.shape[0]
    H = pk["hidden_dim"]
    O = pk["output_dim"]

    inputs = (x, hidden, cell,
              pk["W1x"], pk["W1h"], pk["W1c"], pk["b1"], pk["W2"], pk["b2"])

    out_shapes = (
        jax.ShapeDtypeStruct((B, O), jnp.float32),
        jax.ShapeDtypeStruct((B, H), jnp.float32),
        jax.ShapeDtypeStruct((B, H), jnp.float32),
    )

    return pl.pallas_call(
        _step_kernel,
        out_shape=out_shapes,
        in_specs=[_full_spec(a) for a in inputs],
        out_specs=tuple(_full_spec(s) for s in out_shapes),
    )(*inputs)


def textnet_order2_sequence(xs, h0, c0, pk):
    """Run T steps inside one pallas_call (grid over time).

    State is VMEM-resident across grid steps; weights load into VMEM once
    (constant-index BlockSpecs). Returns (outs (T,B,O), hidden_final, cell_final).
    """
    T, B, I = xs.shape
    H = pk["hidden_dim"]
    O = pk["output_dim"]

    def rep(a):
        nd = a.ndim
        return pl.BlockSpec(a.shape, lambda t, _nd=nd: (0,) * _nd)

    in_specs = [
        pl.BlockSpec((1, B, I), lambda t: (t, 0, 0)),   # current time step of xs
        rep(h0), rep(c0),
        rep(pk["W1x"]), rep(pk["W1h"]), rep(pk["W1c"]), rep(pk["b1"]),
        rep(pk["W2"]), rep(pk["b2"]),
    ]
    out_specs = (
        pl.BlockSpec((1, B, O), lambda t: (t, 0, 0)),
        pl.BlockSpec((B, H), lambda t: (0, 0)),
        pl.BlockSpec((B, H), lambda t: (0, 0)),
    )
    out_shape = (
        jax.ShapeDtypeStruct((T, B, O), jnp.float32),
        jax.ShapeDtypeStruct((B, H), jnp.float32),
        jax.ShapeDtypeStruct((B, H), jnp.float32),
    )

    return pl.pallas_call(
        _seq_kernel,
        grid=(T,),
        in_specs=in_specs,
        out_specs=out_specs,
        out_shape=out_shape,
        scratch_shapes=[
            pltpu.VMEM((B, H), jnp.float32),   # hidden carry
            pltpu.VMEM((B, H), jnp.float32),   # cell carry
        ],
        # recurrence through scratch -> the time axis must stay sequential
        compiler_params=pltpu.CompilerParams(dimension_semantics=("arbitrary",)),
    )(xs, h0, c0,
      pk["W1x"], pk["W1h"], pk["W1c"], pk["b1"], pk["W2"], pk["b2"])


# ----------------------------------------------------------------------------
# Reference (float64 on host) + param init
# ----------------------------------------------------------------------------
def init_params(key, input_dim, hidden_dim, output_dim):
    """Deterministic synthetic parameters matching nn.Linear shapes."""
    comb = input_dim + 2 * hidden_dim
    ks = jax.random.split(key, 8)

    def lin(kw, kb, out_f, in_f):
        bound = 1.0 / np.sqrt(in_f)
        w = jax.random.uniform(kw, (out_f, in_f), jnp.float32, -bound, bound)
        b = jax.random.uniform(kb, (out_f,), jnp.float32, -bound, bound)
        return w, b

    W_ch, b_ch = lin(ks[0], ks[1], hidden_dim, comb)
    W_cm, b_cm = lin(ks[2], ks[3], MID, comb)
    W_mo, b_mo = lin(ks[4], ks[5], output_dim, MID)
    W_c, b_c = lin(ks[6], ks[7], hidden_dim, hidden_dim)

    return dict(
        input_dim=input_dim, hidden_dim=hidden_dim, output_dim=output_dim,
        W_comb_hidden=W_ch, b_comb_hidden=b_ch,
        W_comb_middle=W_cm, b_comb_middle=b_cm,
        W_middle_out=W_mo, b_middle_out=b_mo,
        W_cell=W_c, b_cell=b_c,
    )


def reference_forward_np(x, hidden, cell, p):
    """Host float64 reference (avoids TPU default-precision matmul ambiguity)."""
    f64 = lambda a: np.asarray(a, np.float64)
    comb = np.concatenate([f64(x), f64(hidden), f64(cell)], axis=1)
    hid = comb @ f64(p["W_comb_hidden"]).T + f64(p["b_comb_hidden"])
    mid = comb @ f64(p["W_comb_middle"]).T + f64(p["b_comb_middle"])
    out = mid @ f64(p["W_middle_out"]).T + f64(p["b_middle_out"])
    cell_new = np.tanh(hid @ f64(p["W_cell"]).T + f64(p["b_cell"]))
    return out, hid, cell_new


# ----------------------------------------------------------------------------
# Main
# ----------------------------------------------------------------------------
if __name__ == "__main__":
    B, I, H, O, T = 8, 32, 32, 16, 6
    key = jax.random.PRNGKey(0)
    kx, kh, kp, ks = jax.random.split(key, 4)

    x = jax.random.normal(kx, (B, I), jnp.float32)
    hidden = jax.random.normal(kh, (B, H), jnp.float32)
    cell = jnp.zeros((B, H), jnp.float32)   # self.cell starts as zeros in PyTorch
    params = init_params(kp, I, H, O)
    packed = prepare_params(params)         # one-time packing (hoisted)

    # --- single step (matches TEXTnetOrder2.forward) -------------------------
    out, hid_new, cell_new = textnet_order2_forward(x, hidden, cell, packed)
    jax.block_until_ready((out, hid_new, cell_new))

    ro, rh, rc = reference_forward_np(x, hidden, cell, params)
    np.testing.assert_allclose(np.asarray(out), ro, rtol=1e-4, atol=1e-4)
    np.testing.assert_allclose(np.asarray(hid_new), rh, rtol=1e-4, atol=1e-4)
    np.testing.assert_allclose(np.asarray(cell_new), rc, rtol=1e-4, atol=1e-4)

    # --- sequence version: T steps in one kernel, state resident in VMEM -----
    xs = jax.random.normal(ks, (T, B, I), jnp.float32)
    outs, h_fin, c_fin = textnet_order2_sequence(xs, hidden, cell, packed)
    jax.block_until_ready((outs, h_fin, c_fin))

    h_r, c_r = np.asarray(hidden), np.asarray(cell)
    ref_outs = []
    for t in range(T):
        o_r, h_r, c_r = reference_forward_np(np.asarray(xs[t]), h_r, c_r, params)
        ref_outs.append(o_r)
    ref_outs = np.stack(ref_outs, axis=0)
    np.testing.assert_allclose(np.asarray(outs), ref_outs, rtol=1e-3, atol=1e-3)
    np.testing.assert_allclose(np.asarray(h_fin), h_r, rtol=1e-3, atol=1e-3)
    np.testing.assert_allclose(np.asarray(c_fin), c_r, rtol=1e-3, atol=1e-3)

    print("KERNEL_OK")
</pallas_src>

<mosaic_0001>
module attributes {stable_mosaic.version = 11 : i64} {
  func.func @_step_kernel(%arg0: memref<8x32xf32, #tpu.memory_space<vmem>>, %arg1: memref<8x32xf32, #tpu.memory_space<vmem>>, %arg2: memref<8x32xf32, #tpu.memory_space<vmem>>, %arg3: memref<32x160xf32, #tpu.memory_space<vmem>>, %arg4: memref<32x160xf32, #tpu.memory_space<vmem>>, %arg5: memref<32x160xf32, #tpu.memory_space<vmem>>, %arg6: memref<1x160xf32, #tpu.memory_space<vmem>>, %arg7: memref<160x48xf32, #tpu.memory_space<vmem>>, %arg8: memref<1x48xf32, #tpu.memory_space<vmem>>, %arg9: memref<8x16xf32, #tpu.memory_space<vmem>>, %arg10: memref<8x32xf32, #tpu.memory_space<vmem>>, %arg11: memref<8x32xf32, #tpu.memory_space<vmem>>) attributes {dimension_semantics = [], scalar_prefetch = 0 : i64, scratch_operands = 0 : i64, tpu.core_type = #tpu.core_type<tc>} {
    %c0 = arith.constant 0 : index
    %c0_0 = arith.constant 0 : index
    %0 = vector.load %arg0[%c0, %c0_0] : memref<8x32xf32, #tpu.memory_space<vmem>>, vector<8x32xf32>
    %c0_1 = arith.constant 0 : index
    %c0_2 = arith.constant 0 : index
    %1 = vector.load %arg3[%c0_1, %c0_2] : memref<32x160xf32, #tpu.memory_space<vmem>>, vector<32x160xf32>
    %cst = arith.constant dense<0.000000e+00> : vector<8x160xf32>
    %2 = tpu.matmul %0, %1, %cst {dimension_numbers = #tpu.dot_dimension_numbers<[1], [0], [0], [1], [0, 0, 1, 1], [], []>} : vector<8x32xf32>, vector<32x160xf32>, vector<8x160xf32> -> vector<8x160xf32>
    %c0_3 = arith.constant 0 : index
    %c0_4 = arith.constant 0 : index
    %3 = vector.load %arg1[%c0_3, %c0_4] : memref<8x32xf32, #tpu.memory_space<vmem>>, vector<8x32xf32>
    %c0_5 = arith.constant 0 : index
    %c0_6 = arith.constant 0 : index
    %4 = vector.load %arg4[%c0_5, %c0_6] : memref<32x160xf32, #tpu.memory_space<vmem>>, vector<32x160xf32>
    %cst_7 = arith.constant dense<0.000000e+00> : vector<8x160xf32>
    %5 = tpu.matmul %3, %4, %cst_7 {dimension_numbers = #tpu.dot_dimension_numbers<[1], [0], [0], [1], [0, 0, 1, 1], [], []>} : vector<8x32xf32>, vector<32x160xf32>, vector<8x160xf32> -> vector<8x160xf32>
    %6 = arith.addf %2, %5 : vector<8x160xf32>
    %c0_8 = arith.constant 0 : index
    %c0_9 = arith.constant 0 : index
    %7 = vector.load %arg2[%c0_8, %c0_9] : memref<8x32xf32, #tpu.memory_space<vmem>>, vector<8x32xf32>
    %c0_10 = arith.constant 0 : index
    %c0_11 = arith.constant 0 : index
    %8 = vector.load %arg5[%c0_10, %c0_11] : memref<32x160xf32, #tpu.memory_space<vmem>>, vector<32x160xf32>
    %cst_12 = arith.constant dense<0.000000e+00> : vector<8x160xf32>
    %9 = tpu.matmul %7, %8, %cst_12 {dimension_numbers = #tpu.dot_dimension_numbers<[1], [0], [0], [1], [0, 0, 1, 1], [], []>} : vector<8x32xf32>, vector<32x160xf32>, vector<8x160xf32> -> vector<8x160xf32>
    %10 = arith.addf %6, %9 : vector<8x160xf32>
    %c0_13 = arith.constant 0 : index
    %c0_14 = arith.constant 0 : index
    %11 = vector.load %arg6[%c0_13, %c0_14] : memref<1x160xf32, #tpu.memory_space<vmem>>, vector<1x160xf32>
    %12 = vector.broadcast %11 : vector<1x160xf32> to vector<8x160xf32>
    %13 = arith.addf %10, %12 : vector<8x160xf32>
    %14 = vector.extract_strided_slice %13 {offsets = [0, 128], sizes = [8, 32], strides = [1, 1]} : vector<8x160xf32> to vector<8x32xf32>
    %c0_15 = arith.constant 0 : index
    %c0_16 = arith.constant 0 : index
    %15 = vector.load %arg7[%c0_15, %c0_16] : memref<160x48xf32, #tpu.memory_space<vmem>>, vector<160x48xf32>
    %cst_17 = arith.constant dense<0.000000e+00> : vector<8x48xf32>
    %16 = tpu.matmul %13, %15, %cst_17 {dimension_numbers = #tpu.dot_dimension_numbers<[1], [0], [0], [1], [0, 0, 1, 1], [], []>} : vector<8x160xf32>, vector<160x48xf32>, vector<8x48xf32> -> vector<8x48xf32>
    %c0_18 = arith.constant 0 : index
    %c0_19 = arith.constant 0 : index
    %17 = vector.load %arg8[%c0_18, %c0_19] : memref<1x48xf32, #tpu.memory_space<vmem>>, vector<1x48xf32>
    %18 = vector.broadcast %17 : vector<1x48xf32> to vector<8x48xf32>
    %19 = arith.addf %16, %18 : vector<8x48xf32>
    %20 = vector.extract_strided_slice %19 {offsets = [0, 0], sizes = [8, 16], strides = [1, 1]} : vector<8x48xf32> to vector<8x16xf32>
    %c0_20 = arith.constant 0 : index
    %c0_21 = arith.constant 0 : index
    %21 = vector.load %arg9[%c0_20, %c0_21] : memref<8x16xf32, #tpu.memory_space<vmem>>, vector<8x16xf32>
    tpu.vector_store %arg9[%c0_20, %c0_21], %20 {strides = array<i32>} : memref<8x16xf32, #tpu.memory_space<vmem>>, vector<8x16xf32>,
    %c0_22 = arith.constant 0 : index
    %c0_23 = arith.constant 0 : index
    %22 = vector.load %arg10[%c0_22, %c0_23] : memref<8x32xf32, #tpu.memory_space<vmem>>, vector<8x32xf32>
    tpu.vector_store %arg10[%c0_22, %c0_23], %14 {strides = array<i32>} : memref<8x32xf32, #tpu.memory_space<vmem>>, vector<8x32xf32>,
    %23 = vector.extract_strided_slice %19 {offsets = [0, 16], sizes = [8, 32], strides = [1, 1]} : vector<8x48xf32> to vector<8x32xf32>
    %24 = math.tanh %23 : vector<8x32xf32>
    %c0_24 = arith.constant 0 : index
    %c0_25 = arith.constant 0 : index
    %25 = vector.load %arg11[%c0_24, %c0_25] : memref<8x32xf32, #tpu.memory_space<vmem>>, vector<8x32xf32>
    tpu.vector_store %arg11[%c0_24, %c0_25], %24 {strides = array<i32>} : memref<8x32xf32, #tpu.memory_space<vmem>>, vector<8x32xf32>,
    return
  }
}

</mosaic_0001>

<bundles_post_ra>
// kernel: tpu_custom_call.1
= control target key start
LH: loop header
LB: loop body
LE: loop exit
PB: predicated region body
PF: predicated region fallthrough
CT: control target
= control target key end

     0   :  { %17 = vsyncpa [#allocation3], 0  ;;  %v594_v7 = vmov 0.0   ;;  %v595_v8 = vmov 0.0|0.0   ;;  %vm55_vm0 = vcmask 261120   ;;  %s863_s0 = inlined_call_operand.vmem [shape: f32[8,32], index: 0, kind: input, shape index: {}]   ;;  %s864_s1 = inlined_call_operand.vmem [shape: f32[8,32], index: 1, kind: input, shape index: {}]   ;;  %s865_s2 = inlined_call_operand.vmem [shape: f32[8,32], index: 2, kind: input, shape index: {}]   ;;  %s866_s3 = inlined_call_operand.vmem [shape: f32[32,160], index: 3, kind: input, shape index: {}]   ;;  %s867_s4 = inlined_call_operand.vmem [shape: f32[32,160], index: 4, kind: input, shape index: {}]   ;;  %s868_s5 = inlined_call_operand.vmem [shape: f32[32,160], index: 5, kind: input, shape index: {}]   ;;  %s869_s6 = inlined_call_operand.vmem [shape: f32[1,160], index: 6, kind: input, shape index: {}]   ;;  %s870_s7 = inlined_call_operand.vmem [shape: f32[160,48], index: 7, kind: input, shape index: {}]   ;;  %s871_s8 = inlined_call_operand.vmem [shape: f32[1,48], index: 8, kind: input, shape index: {}]   ;;  %s872_s9 = inlined_call_operand.hbm [shape: f32[8,16], index: 9, kind: output, shape index: {0}]   ;;  %s873_s10 = inlined_call_operand.hbm [shape: f32[8,32], index: 10, kind: output, shape index: {1}]   ;;  %s874_s11 = inlined_call_operand.hbm [shape: f32[8,32], index: 11, kind: output, shape index: {2}]  }
   0x1   :  { %v48_v0 = vld [vmem:[%s867_s4 + $0x8] sm:$0xff]  ;;  %v50_v1 = vld [vmem:[%s867_s4 + $0x18] sm:$0xff]  ;;  %v47_v2 = vld [vmem:[%s867_s4] sm:$0xff]  ;;  %123 = vmatprep.mubr.f32.mxu0 %v594_v7  ;;  %482 = vmatprep.subr.bf16.mxu1 %v595_v8 }
   0x2   :  { %v458_v3 = vpack.c.bf16 %v50_v1, %v48_v0  ;;  %v49_v4 = vld [vmem:[%s867_s4 + $0x10] sm:$0xff]  ;;  %v52_v5 = vld [vmem:[%s867_s4 + $0x28] sm:$0xff]  ;;  %v54_v6 = vld [vmem:[%s867_s4 + $0x38] sm:$0xff] }
   0x3   :  { %v460_v9 = vpack.c.bf16 %v49_v4, %v47_v2  ;;  %v462_v10 = vpack.c.bf16 %v54_v6, %v52_v5  ;;  %v51_v11 = vld [vmem:[%s867_s4 + $0x20] sm:$0xff]  ;;  %v53_v12 = vld [vmem:[%s867_s4 + $0x30] sm:$0xff]  ;;  %v39_v13 = vld [vmem:[%s866_s3 + $0x8] sm:$0xff] }
   0x4   :  { %459 = vmatprep.subr.bf16.mxu0 %v458_v3  ;;  %v41_v14 = vld [vmem:[%s866_s3 + $0x18] sm:$0xff]  ;;  %v464_v15 = vpack.c.bf16 %v53_v12, %v51_v11  ;;  %v38_v17 = vld [vmem:[%s866_s3] sm:$0xff]  ;;  %v40_v18 = vld [vmem:[%s866_s3 + $0x10] sm:$0xff] }
   0x5   :  { %461 = vmatpush1.bf16.msra.mxu0 %v460_v9  ;;  %v466_v16 = vpack.c.bf16 %v41_v14, %v39_v13  ;;  %v43_v19 = vld [vmem:[%s866_s3 + $0x28] sm:$0xff]  ;;  %v45_v20 = vld [vmem:[%s866_s3 + $0x38] sm:$0xff]  ;;  %v46_v21 = vld [vmem:[%s864_s1] sm:$0xff]  ;;  %v468_v22 = vpack.c.bf16 %v40_v18, %v38_v17 }
   0x6   :  { %463 = vmatprep.subr.bf16.mxu0 %v462_v10  ;;  %v42_v23 = vld [vmem:[%s866_s3 + $0x20] sm:$0xff]  ;;  %v44_v24 = vld [vmem:[%s866_s3 + $0x30] sm:$0xff]  ;;  %v470_v25 = vpack.c.bf16 %v45_v20, %v43_v19  ;;  %v206_v26 = vld [vmem:[%s868_s5 + $0x8] sm:$0xff] }
   0x7   :  { %v303_v27 = vld [vmem:[%s870_s7] sm:$0xff]  ;;  %v304_v28 = vld [vmem:[%s870_s7 + $0x8] sm:$0xff]  ;;  %v208_v29 = vld [vmem:[%s868_s5 + $0x18] sm:$0xff]  ;;  %v472_v33 = vpack.c.bf16 %v44_v24, %v42_v23 }
   0x8   :  { %v483_v30 = vpack.c.bf16 %v304_v28, %v303_v27  ;;  %v305_v31 = vld [vmem:[%s870_s7 + $0x10] sm:$0xff]  ;;  %v306_v32 = vld [vmem:[%s870_s7 + $0x18] sm:$0xff]  ;;  %v474_v34 = vpack.c.bf16 %v208_v29, %v206_v26  ;;  %v205_v35 = vld [vmem:[%s868_s5] sm:$0xff] }
   0x9   :  { %465 = vmatpush1.bf16.msra.mxu0 %v464_v15  ;;  %v207_v36 = vld [vmem:[%s868_s5 + $0x10] sm:$0xff]  ;;  %v210_v37 = vld [vmem:[%s868_s5 + $0x28] sm:$0xff]  ;;  %v486_v38 = vpack.c.bf16 %v306_v32, %v305_v31  ;;  %v212_v39 = vld [vmem:[%s868_s5 + $0x38] sm:$0xff] }
   0xa   :  { %467 = vmatprep.subr.bf16.mxu0 %v466_v16  ;;  %484 = vmatpush1.bf16.msra.mxu1 %v483_v30  ;;  %v307_v40 = vld [vmem:[%s870_s7 + $0x20] sm:$0xff]  ;;  %v308_v41 = vld [vmem:[%s870_s7 + $0x28] sm:$0xff] }
   0xb   :  { %485 = vmatprep.subr.bf16.mxu1 %v595_v8 }
   0xc   :  { %453 = vmatmul.mubr.msk.f32.vlgmr.msra.gmra.mrb[0].mxu0 %vm55_vm0, %v46_v21 }
   0xd   :  { %469 = vmatpush1.bf16.msra.mxu0 %v468_v22  ;;  %197 = vmatprep.mubr.f32.mxu0 %v594_v7 }
   0xe   :  { %471 = vmatprep.subr.bf16.mxu0 %v470_v25 }
   0xf   :  { %18 = vsyncpa [#allocation5], 0  ;;  %v37_v42 = vld [vmem:[%s863_s0] sm:$0xff]  ;;  %v476_v43 = vpack.c.bf16 %v207_v36, %v205_v35  ;;  %v478_v44 = vpack.c.bf16 %v212_v39, %v210_v37  ;;  %v211_v46 = vld [vmem:[%s868_s5 + $0x30] sm:$0xff]  ;;  %487 = vmatpush1.bf16.msra.mxu1 %v486_v38  ;;  %v489_v47 = vpack.c.bf16 %v308_v41, %v307_v40  ;;  %s596_s23 = smov [#allocation4]   ;;  %vm403_vm1 = vcmask 130048  }
  0x10   :  { %v209_v45 = vld [vmem:[%s868_s5 + $0x20] sm:$0xff]  ;;  %488 = vmatprep.subr.bf16.mxu1 %v595_v8  ;;  %v309_v48 = vld [vmem:[%s870_s7 + $0x30] sm:$0xff]  ;;  %v310_v49 = vld [vmem:[%s870_s7 + $0x38] sm:$0xff]  ;;  %s428_s24 = sshll.u32 %s596_s23, 4  ;;  %s429_s24 = int_to_ptr.vmem [resolvable:$true] %s428_s24 }
  0x11   :  { %473 = vmatpush1.bf16.msra.mxu0 %v472_v33  ;;  %v480_v50 = vpack.c.bf16 %v211_v46, %v209_v45  ;;  %v492_v51 = vpack.c.bf16 %v310_v49, %v309_v48  ;;  %v311_v52 = vld [vmem:[%s870_s7 + $0x40] sm:$0xff]  ;;  %v312_v53 = vld [vmem:[%s870_s7 + $0x48] sm:$0xff]  ;;  %v313_v56 = vld [vmem:[%s870_s7 + $0x50] sm:$0xff]  ;;  %s524_s26 = scalar_lea.vmem %s429_s24, 128  ;;  %p529_p1 = scmp.lt.s32.totalorder %s429_s24, %s429_s24 }
  0x12   :  { %475 = vmatprep.subr.bf16.mxu0 %v474_v34  ;;  %v204_v54 = vld [vmem:[%s865_s2] sm:$0xff]  ;;  %v495_v55 = vpack.c.bf16 %v312_v53, %v311_v52  ;;  %v314_v57 = vld [vmem:[%s870_s7 + $0x58] sm:$0xff]  ;;  %v316_v60 = vld [vmem:[%s870_s7 + $0x68] sm:$0xff]  ;;  %p525_p0 = scmp.ne.s32.totalorder %s429_s24, %s524_s26  ;;  %p530_p2 = scmp.lt.s32.totalorder %s524_s26, %s524_s26 }
  0x13   :  { %490 = vmatpush1.bf16.msra.mxu1 %v489_v47  ;;  %v498_v58 = vpack.c.bf16 %v314_v57, %v313_v56  ;;  %v315_v59 = vld [vmem:[%s870_s7 + $0x60] sm:$0xff]  ;;  %v317_v62 = vld [vmem:[%s870_s7 + $0x70] sm:$0xff]  ;;  %v318_v63 = vld [vmem:[%s870_s7 + $0x78] sm:$0xff] }
  0x14   :  { %454 = vmatmul.mubr.msk.f32.vlgmr.msra.gmra.mrb[0].mxu0 %vm55_vm0, %v37_v42  ;;  %491 = vmatprep.subr.bf16.mxu1 %v595_v8  ;;  %v501_v61 = vpack.c.bf16 %v316_v60, %v315_v59  ;;  %v504_v0 = vpack.c.bf16 %v318_v63, %v317_v62  ;;  %v319_v1 = vld [vmem:[%s870_s7 + $0x80] sm:$0xff]  ;;  %v320_v2 = vld [vmem:[%s870_s7 + $0x88] sm:$0xff]  ;;  %v321_v4 = vld [vmem:[%s870_s7 + $0x90] sm:$0xff]  ;;  %p531_p3 = por %p530_p2, %p529_p1 }
  0x15   :  { %477 = vmatpush1.bf16.msra.mxu0 %v476_v43  ;;  %280 = vmatprep.mubr.f32.mxu0 %v594_v7  ;;  %v507_v3 = vpack.c.bf16 %v320_v2, %v319_v1  ;;  %v322_v5 = vld [vmem:[%s870_s7 + $0x98] sm:$0xff]  ;;  %v291_v7 = vlaneseq  ;;  %v289_v11 = vld [vmem:[%s869_s6] sm:$0x3]  ;;  %s597_s6 = smov [#allocation2]  }
  0x16   :  { %479 = vmatprep.subr.bf16.mxu0 %v478_v44  ;;  %v510_v6 = vpack.c.bf16 %v322_v5, %v321_v4  ;;  %v456_v18 = vld [vmem:[%s871_s8] ss:$0 sm:$0xff]  ;;  %s418_s25 = sshll.u32 %s597_s6, 4  ;;  %p532_p4 = pnand %p531_p3, %p525_p0  ;;  %s419_s25 = int_to_ptr.vmem [resolvable:$true] %s418_s25 }
  0x17   :  { %493 = vmatpush1.bf16.msra.mxu1 %v492_v51  ;;  %v292_v9 = vshrl.u32 %v291_v7, 7 }
  0x18   :  { %494 = vmatprep.subr.bf16.mxu1 %v595_v8 }
  0x19   :  { %481 = vmatpush1.bf16.msra.mxu0 %v480_v50  ;;  %v297_v10 = vsub.s32 1, %v292_v9  ;;  %v293_v12 = vsub.s32 0, %v292_v9 }
  0x1b   :  { %496 = vmatpush1.bf16.msra.mxu1 %v495_v55  ;;  %v298_v13 = vrot.slane %v289_v11, %v297_v10 }
  0x1c   :  { %455 = vmatmul.mubr.msk.f32.vlgmr.msra.gmra.mrb[0].mxu0 %vm55_vm0, %v204_v54  ;;  %497 = vmatprep.subr.bf16.mxu1 %v595_v8 }
  0x1f   :  { %499 = vmatpush1.bf16.msra.mxu1 %v498_v58 }
  0x20   :  { %500 = vmatprep.subr.bf16.mxu1 %v595_v8 }
  0x23   :  { %502 = vmatpush1.bf16.msra.mxu1 %v501_v61 }
  0x24   :  { %503 = vmatprep.subr.bf16.mxu1 %v595_v8 }
  0x27   :  { %505 = vmatpush1.bf16.msra.mxu1 %v504_v0 }
  0x28   :  { %506 = vmatprep.subr.bf16.mxu1 %v595_v8 }
  0x2b   :  { %508 = vmatpush1.bf16.msra.mxu1 %v507_v3 }
  0x2c   :  { %509 = vmatprep.subr.bf16.mxu1 %v595_v8  ;;  %v294_v8 = vrot.slane %v289_v11, %v293_v12 }
  0x2f   :  { %511 = vmatpush1.bf16.msra.mxu1 %v510_v6 }
  0xef   :  { %v282_v14 = vpop.f32.mrb[0].mxu0 }
  0xf0   :  { %v284_v15 = vpop.f32.mrb[1].mxu0  ;;  %v301_v17 = vadd.f32 %v294_v8, %v282_v14 }
  0xf1   :  { %v302_v16 = vadd.f32 %v298_v13, %v284_v15 }
  0xf3   :  { %405 = vst.msk [vmem:[#allocation4] sm:$0xff] %vm55_vm0, %v302_v16  ;;  %457 = vmatprep.mubr.msk.f32.mxu1 %vm55_vm0, %v302_v16 }
  0xf4   :  { %398 = vmatmul.mubr.f32.vlgmr.msra.gmra.mrb[0].mxu1 %v301_v17 }
 0x1c7   :  { %v399_v19 = vpop.f32.mrb[0].mxu1 }
 0x1c8   :  { %v400_v20 = vadd.f32 %v456_v18, %v399_v19  ;;  %v401_v21 = vpop.f32.mrb[1].mxu1 }
 0x1c9   :  { %535 = shalt.err (!%p532_p4)
}
 0x1ca   :  { %s536_s8 = scalar_lea.hbm %s873_s10, 128 }
 0x1cb   :  { %p537_p5 = scmp.ne.s32.totalorder %s873_s10, %s536_s8  ;;  %p540_p6 = scmp.lt.u32.totalorder %s536_s8, %s873_s10 }
 0x1cd   :  { %p542_p7 = pnand %p540_p6, %p537_p5 }
 0x1cf   :  { %545 = shalt.err (!%p542_p7)
}
 0x1d0   :  { %431 = dma.vmem_to_hbm [thread:$0]  %s429_s24, 128, %s873_s10, [#allocation5]   ;;  %522 = vtanh.f32 %v400_v20  ;;  %404 = vst.msk [vmem:[#allocation2] sm:$0xff] %vm403_vm1, %v400_v20 }
 0x1d1   :  { %s546_s15 = scalar_lea.vmem %s419_s25, 128  ;;  %p551_p9 = scmp.lt.s32.totalorder %s419_s25, %s419_s25 }
 0x1d2   :  { %p547_p8 = scmp.ne.s32.totalorder %s419_s25, %s546_s15  ;;  %p552_p10 = scmp.lt.s32.totalorder %s546_s15, %s546_s15 }
 0x1d4   :  { %p553_p11 = por %p552_p10, %p551_p9 }
 0x1d6   :  { %p554_p12 = pnand %p553_p11, %p547_p8 }
 0x1d8   :  { %557 = shalt.err (!%p554_p12)
}
 0x1d9   :  { %s558_s17 = scalar_lea.hbm %s872_s9, 128 }
 0x1da   :  { %p559_p13 = scmp.ne.s32.totalorder %s872_s9, %s558_s17  ;;  %p562_p0 = scmp.lt.u32.totalorder %s558_s17, %s872_s9 }
 0x1dc   :  { %p564_p1 = pnand %p562_p0, %p559_p13 }
 0x1de   :  { %567 = shalt.err (!%p564_p1)
}
 0x1df   :  { %421 = dma.vmem_to_hbm [thread:$0]  %s419_s25, 128, %s872_s9, [#allocation3]   ;;  %v523_v22 = vpop.eup %522 }
 0x1e0   :  { %s598_s5 = smov 112   ;;  %s599_s21 = smov [#allocation6]  }
 0x1e1   :  { %408 = vrot.lane.b32.xlu0 %v523_v22, %s598_s5  ;;  %s438_s4 = sshll.u32 %s599_s21, 4  ;;  %s439_s4 = int_to_ptr.vmem [resolvable:$true] %s438_s4 }
 0x1e2   :  { %s568_s7 = scalar_lea.vmem %s439_s4, 128  ;;  %p573_p3 = scmp.lt.s32.totalorder %s439_s4, %s439_s4 }
 0x1e3   :  { %p569_p2 = scmp.ne.s32.totalorder %s439_s4, %s568_s7  ;;  %p574_p4 = scmp.lt.s32.totalorder %s568_s7, %s568_s7 }
 0x1e5   :  { %p575_p5 = por %p574_p4, %p573_p3 }
 0x1e7   :  { %p576_p6 = pnand %p575_p5, %p569_p2 }
 0x253   :  { %v409_v23 = vpop.permute.xlu0 %408 }
 0x254   :  { %411 = vst.msk [vmem:[#allocation6] sm:$0xff] %vm55_vm0, %v409_v23 }
 0x255   :  { %579 = shalt.err (!%p576_p6)
}
 0x256   :  { %s580_s9 = scalar_lea.hbm %s874_s11, 128 }
 0x257   :  { %p581_p7 = scmp.ne.s32.totalorder %s874_s11, %s580_s9  ;;  %p584_p8 = scmp.lt.u32.totalorder %s580_s9, %s874_s11 }
 0x259   :  { %p586_p9 = pnand %p584_p8, %p581_p7 }
 0x25b   :  { %589 = shalt.err (!%p586_p9)
}
 0x25c   :  { %441 = dma.vmem_to_hbm [thread:$0]  %s439_s4, 128, %s874_s11, [#allocation5]  }
 0x25d   :  { %590 = dma.done.wait [#allocation3], 128  }
 0x25e   :  { %591 = vsyncadd [#allocation3], 4294967168 }
 0x25f   :  { %592 = dma.done.wait [#allocation5], 256  }
 0x260   :  { %593 = vsyncadd [#allocation5], 4294967040 }
 0x261   :  { %451 = vsyncpa [#allocation3], 1 }
 0x262   :  { %452 = vsyncpa [#allocation5], 1 }

</bundles_post_ra>
